<compile_context>
chip_gen: v7x
topology: tpu7x:2x2x1
jax: 0.10.0
libtpu: 0.0.40
codegen_flags: <defaults>
</compile_context>

<pallas_src>
import functools
import math

import jax
import jax.numpy as jnp
from jax.experimental import pallas as pl
from jax.experimental.pallas import tpu as pltpu

LN_EPS = 1e-5                     # nn.LayerNorm default eps
HEAD_DIM = 64                     # SelfAttention.head_dim in the PyTorch module
_INV_SQRT2 = 1.0 / math.sqrt(2.0)

# Explicit scoped-VMEM budget (v7x has only 64 MiB physical per TC).
_COMPILER_PARAMS = pltpu.CompilerParams(
    dimension_semantics=("parallel",),
    vmem_limit_bytes=32 * 1024 * 1024,
)


def _pad_rows(x2, tm):
    """Pad the row dim up to a multiple of tm (ceil-div tiling for any N)."""
    n = x2.shape[0]
    n_pad = ((n + tm - 1) // tm) * tm
    if n_pad != n:
        x2 = jnp.pad(x2, ((0, n_pad - n), (0, 0)))
    return x2, n


# ---------------------------------------------------------------------------
# Kernels
# ---------------------------------------------------------------------------
def _proj_in_kernel(x_ref, w_ref, b_ref, o_ref):
    # x: (tm, dim+1) f32, w: (dim+1, dim) bf16 (modulation scale pre-folded).
    x = x_ref[...].astype(jnp.bfloat16)                       # MXU operand bf16
    y = jnp.dot(x, w_ref[...], preferred_element_type=jnp.float32) + b_ref[...]
    o_ref[...] = y.astype(o_ref.dtype)


def _attn_kernel(x_ref, wqkv_ref, bqkv_ref, wout_ref, bout_ref, o_ref, *,
                 heads, head_dim):
    # One batch sample per grid step: x (1, S, D).
    # LN gamma/beta folded into wqkv/bqkv; layer_scale folded into wout/bout.
    x = x_ref[0].astype(jnp.float32)                          # (S, D)
    d = heads * head_dim

    mean = jnp.mean(x, axis=-1, keepdims=True)
    cen = x - mean
    var = jnp.mean(cen * cen, axis=-1, keepdims=True)
    xn = cen * jax.lax.rsqrt(var + LN_EPS)                    # f32 elementwise

    qkv = jnp.dot(xn.astype(jnp.bfloat16), wqkv_ref[...],
                  preferred_element_type=jnp.float32) + bqkv_ref[...]

    scale = head_dim ** -0.5
    outs = []
    for h in range(heads):                                    # static unroll
        lo = h * head_dim
        q = qkv[:, lo:lo + head_dim].astype(jnp.bfloat16)
        k = qkv[:, d + lo:d + lo + head_dim].astype(jnp.bfloat16)
        v = qkv[:, 2 * d + lo:2 * d + lo + head_dim].astype(jnp.bfloat16)
        s = jax.lax.dot_general(q, k, (((1,), (1,)), ((), ())),
                                preferred_element_type=jnp.float32) * scale
        m = jnp.max(s, axis=-1, keepdims=True)                # f32 softmax
        p = jnp.exp(s - m)
        p = p / jnp.sum(p, axis=-1, keepdims=True)
        outs.append(jnp.dot(p.astype(jnp.bfloat16), v,
                            preferred_element_type=jnp.float32))
    attn = outs[0] if heads == 1 else jnp.concatenate(outs, axis=-1)

    y = jnp.dot(attn.astype(jnp.bfloat16), wout_ref[...],
                preferred_element_type=jnp.float32) + bout_ref[...]
    o_ref[0] = (x + y).astype(o_ref.dtype)                    # residual in f32


def _block_kernel(x_ref, w1_ref, b1_ref, w2_ref, b2_ref, o_ref):
    # Row-tiled MLP Block.  LN gamma/beta folded into w1/b1, layer_scale into
    # w2/b2, so no separate affine / scale VPU ops remain.
    x = x_ref[...].astype(jnp.float32)
    mean = jnp.mean(x, axis=-1, keepdims=True)
    cen = x - mean
    var = jnp.mean(cen * cen, axis=-1, keepdims=True)
    xn = cen * jax.lax.rsqrt(var + LN_EPS)

    h = jnp.dot(xn.astype(jnp.bfloat16), w1_ref[...],
                preferred_element_type=jnp.float32) + b1_ref[...]
    # Exact (erf) GELU for nn.GELU parity.  (tanh-approx would move the
    # transcendental onto the EUP but changes numerics - kept exact.)
    h = 0.5 * h * (1.0 + jax.lax.erf(h * _INV_SQRT2))
    y = jnp.dot(h.astype(jnp.bfloat16), w2_ref[...],
                preferred_element_type=jnp.float32) + b2_ref[...]
    o_ref[...] = (x + y).astype(o_ref.dtype)


def _head_kernel(x_ref, w_ref, b_ref, o_ref):
    # mean over seq + to_logits.
    x = x_ref[...].astype(jnp.float32)                        # (B, S, D)
    m = jnp.mean(x, axis=1)                                   # (B, D)
    o_ref[...] = (jnp.dot(m.astype(jnp.bfloat16), w_ref[...],
                          preferred_element_type=jnp.float32)
                  + b_ref[...]).astype(o_ref.dtype)


# ---------------------------------------------------------------------------
# pallas_call wrappers
# ---------------------------------------------------------------------------
def _project_in_pallas(tok, w_bf16, b, *, tm):
    B, S, K = tok.shape
    D = w_bf16.shape[1]
    x2, n = _pad_rows(tok.reshape(B * S, K), tm)
    n_pad = x2.shape[0]
    out = pl.pallas_call(
        _proj_in_kernel,
        out_shape=jax.ShapeDtypeStruct((n_pad, D), jnp.float32),
        grid_spec=pltpu.PrefetchScalarGridSpec(
            num_scalar_prefetch=0,
            grid=(n_pad // tm,),
            in_specs=[
                pl.BlockSpec((tm, K), lambda i: (i, 0)),
                # Grid-invariant weights; single-buffer (pl.Buffered(1)) for
                # production-sized D to halve their VMEM footprint on v7x.
                pl.BlockSpec((K, D), lambda i: (0, 0)),
                pl.BlockSpec((1, D), lambda i: (0, 0)),
            ],
            out_specs=pl.BlockSpec((tm, D), lambda i: (i, 0)),
        ),
        compiler_params=_COMPILER_PARAMS,
    )(x2, w_bf16, b)
    return out[:n].reshape(B, S, D)


def _attention_pallas(x, lp):
    B, S, D = x.shape
    heads = D // HEAD_DIM
    kernel = functools.partial(_attn_kernel, heads=heads, head_dim=HEAD_DIM)
    full = lambda shape: pl.BlockSpec(shape, lambda b: (0, 0))
    return pl.pallas_call(
        kernel,
        out_shape=jax.ShapeDtypeStruct((B, S, D), x.dtype),
        grid_spec=pltpu.PrefetchScalarGridSpec(
            num_scalar_prefetch=0,
            grid=(B,),                       # >=2 steps -> pipelined, 2-TC split
            in_specs=[
                pl.BlockSpec((1, S, D), lambda b: (b, 0, 0)),
                full((D, 3 * D)),            # wqkv (LN gamma folded)
                full((1, 3 * D)),            # bqkv (= beta @ wqkv)
                full((D, D)),                # wout (layer_scale folded)
                full((1, D)),                # bout (layer_scale folded)
            ],
            out_specs=pl.BlockSpec((1, S, D), lambda b: (b, 0, 0)),
        ),
        compiler_params=_COMPILER_PARAMS,
    )(x, lp["wqkv"], lp["bqkv"], lp["wout"], lp["bout"])


def _mlp_block_pallas(x, lp, *, tm):
    B, S, D = x.shape
    H = lp["w1"].shape[1]
    x2, n = _pad_rows(x.reshape(B * S, D), tm)
    n_pad = x2.shape[0]
    full = lambda shape: pl.BlockSpec(shape, lambda i: (0, 0))
    out = pl.pallas_call(
        _block_kernel,
        out_shape=jax.ShapeDtypeStruct((n_pad, D), x.dtype),
        grid_spec=pltpu.PrefetchScalarGridSpec(
            num_scalar_prefetch=0,
            grid=(n_pad // tm,),
            in_specs=[
                pl.BlockSpec((tm, D), lambda i: (i, 0)),
                full((D, H)), full((1, H)), full((H, D)), full((1, D)),
            ],
            out_specs=pl.BlockSpec((tm, D), lambda i: (i, 0)),
        ),
        compiler_params=_COMPILER_PARAMS,
    )(x2, lp["w1"], lp["b1"], lp["w2"], lp["b2"])
    return out[:n].reshape(B, S, D)


def _head_pallas(x, w_bf16, b):
    B, S, D = x.shape
    C = w_bf16.shape[1]
    return pl.pallas_call(
        _head_kernel,
        out_shape=jax.ShapeDtypeStruct((B, C), jnp.float32),
        grid_spec=pltpu.PrefetchScalarGridSpec(
            num_scalar_prefetch=0,
            grid=(1,),
            in_specs=[
                pl.BlockSpec((B, S, D), lambda i: (0, 0, 0)),
                pl.BlockSpec((D, C), lambda i: (0, 0)),
                pl.BlockSpec((1, C), lambda i: (0, 0)),
            ],
            out_specs=pl.BlockSpec((B, C), lambda i: (0, 0)),
        ),
        compiler_params=pltpu.CompilerParams(
            dimension_semantics=("arbitrary",),
            vmem_limit_bytes=32 * 1024 * 1024),
    )(x, w_bf16, b)


# ---------------------------------------------------------------------------
# Parameter handling / full forward
# ---------------------------------------------------------------------------
def _preamble(l, base, conf):
    """Weights-as-tokens preamble (pure layout plumbing; left to XLA)."""
    toks = []
    for w, b in l:
        assert w.ndim == 3, "w should be 3D"
        assert b.ndim == 2, "b should be 2D"
        wb = jnp.concatenate([w, b[:, None, :]], axis=1)      # (n, ci+1, co)
        toks.append(jnp.transpose(wb, (0, 2, 1)))             # (n, co, ci+1)
    tok = jnp.concatenate(toks, axis=1) + base
    if conf["modulation_scale"] > 0:
        return tok          # scalar modulation folded into project_in weight
    # F.layer_norm over the trailing two dims (no affine): one-off glue.
    mean = jnp.mean(tok, axis=(1, 2), keepdims=True)
    var = jnp.mean((tok - mean) ** 2, axis=(1, 2), keepdims=True)
    return (tok - mean) * jax.lax.rsqrt(var + LN_EPS)


def fold_params(params, conf):
    """Fold LN affine + layer scales (+ modulation scale) into the adjacent
    linear weights; store MXU weights in bf16, keep biases f32."""
    bf = jnp.bfloat16
    pw = params["proj_w"]
    if conf["modulation_scale"] > 0:
        pw = pw * conf["modulation_scale"]
    fp = {
        "proj_w": pw.astype(bf),
        "proj_b": params["proj_b"].reshape(1, -1),
        "logits_w": params["logits_w"].astype(bf),
        "logits_b": params["logits_b"].reshape(1, -1),
        "layers": [],
    }
    for layer in params["layers"]:
        a, m = layer["attn"], layer["block"]
        fp["layers"].append({
            # SelfAttention: LN affine -> to_qkv; layer_scale -> to_out
            "wqkv": (a["gamma"][:, None] * a["wqkv"]).astype(bf),
            "bqkv": (a["beta"] @ a["wqkv"]).reshape(1, -1),
            "wout": (a["wout"] * a["lscale"][None, :]).astype(bf),
            "bout": (a["bout"] * a["lscale"]).reshape(1, -1),
            # Block: LN affine -> w1/b1; layer_scale -> w2/b2
            "w1": (m["gamma"][:, None] * m["w1"]).astype(bf),
            "b1": (m["beta"] @ m["w1"] + m["b1"]).reshape(1, -1),
            "w2": (m["w2"] * m["scale"][None, :]).astype(bf),
            "b2": (m["b2"] * m["scale"]).reshape(1, -1),
        })
    return fp


def wt_forward(l, params, conf, *, tm=512):
    """Pallas forward pass of WT.forward(l)."""
    assert tm % 8 == 0
    fp = fold_params(params, conf)
    tok = _preamble(l, params["base"], conf)          # (B, S, dim+1)
    x = _project_in_pallas(tok, fp["proj_w"], fp["proj_b"], tm=tm)
    for lp in fp["layers"]:
        x = _attention_pallas(x, lp)                  # SelfAttention (+res)
        x = _mlp_block_pallas(x, lp, tm=tm)           # MLP Block (+res)
    return _head_pallas(x, fp["logits_w"], fp["logits_b"])


def init_wt_params(key, dim, conf):
    H = dim * conf["mlp_mult"]
    C = conf["class_count"]
    depth_s = len(conf["siren_dim"])
    assert dim % HEAD_DIM == 0
    keys = iter(jax.random.split(key, 8 + 12 * conf["classifier_depth"]))

    def lin(fan_in, shape):
        lim = 1.0 / math.sqrt(fan_in)
        return jax.random.uniform(next(keys), shape, jnp.float32, -lim, lim)

    def ln_affine():
        # PyTorch inits gamma=1, beta=0 (and base=0); perturb them so the
        # gamma/beta/base folding paths are genuinely exercised by the check.
        g = 1.0 + 0.1 * jax.random.normal(next(keys), (dim,), jnp.float32)
        b = 0.1 * jax.random.normal(next(keys), (dim,), jnp.float32)
        return g, b

    params = {
        "base": 0.02 * jax.random.normal(next(keys),
                                         (1, depth_s * dim, dim + 1), jnp.float32),
        "proj_w": lin(dim + 1, (dim + 1, dim)),
        "proj_b": lin(dim + 1, (dim,)),
        "logits_w": lin(dim, (dim, C)),
        "logits_b": lin(dim, (C,)),
        "layers": [],
    }
    for _ in range(conf["classifier_depth"]):
        ag, ab = ln_affine()
        bg, bb = ln_affine()
        params["layers"].append({
            "attn": {
                "gamma": ag, "beta": ab,
                "wqkv": lin(dim, (dim, 3 * dim)),             # bias=False
                "wout": lin(dim, (dim, dim)),
                "bout": lin(dim, (dim,)),
                "lscale": 0.1 * jnp.ones((dim,), jnp.float32),
            },
            "block": {
                "gamma": bg, "beta": bb,
                "w1": lin(dim, (dim, H)),
                "b1": lin(dim, (H,)),
                "w2": lin(H, (H, dim)),
                "b2": lin(H, (dim,)),
                "scale": 0.1 * jnp.ones((dim,), jnp.float32),
            },
        })
    return params


# ---------------------------------------------------------------------------
# Pure-JAX references
# ---------------------------------------------------------------------------
def _ln(x, g, b):
    mean = jnp.mean(x, axis=-1, keepdims=True)
    var = jnp.mean((x - mean) ** 2, axis=-1, keepdims=True)
    return (x - mean) * jax.lax.rsqrt(var + LN_EPS) * g + b


def _split_heads(qkv, B, S, D, heads):
    q = qkv[..., :D].reshape(B, S, heads, HEAD_DIM).transpose(0, 2, 1, 3)
    k = qkv[..., D:2 * D].reshape(B, S, heads, HEAD_DIM).transpose(0, 2, 1, 3)
    v = qkv[..., 2 * D:].reshape(B, S, heads, HEAD_DIM).transpose(0, 2, 1, 3)
    return q, k, v


def reference_f32(l, params, conf):
    """Pure-f32 JAX reference of the PyTorch module (unfused weights)."""
    tok = _preamble(l, params["base"], conf)
    if conf["modulation_scale"] > 0:
        tok = tok * conf["modulation_scale"]
    x = tok @ params["proj_w"] + params["proj_b"]
    B, S, D = x.shape
    heads = D // HEAD_DIM
    for layer in params["layers"]:
        a, m = layer["attn"], layer["block"]
        xn = _ln(x, a["gamma"], a["beta"])
        q, k, v = _split_heads(xn @ a["wqkv"], B, S, D, heads)
        att = jax.nn.softmax(jnp.einsum("bhid,bhjd->bhij", q, k)
                             * HEAD_DIM ** -0.5, axis=-1)
        o = jnp.einsum("bhij,bhjd->bhid", att, v)
        o = o.transpose(0, 2, 1, 3).reshape(B, S, D)
        x = x + a["lscale"] * (o @ a["wout"] + a["bout"])
        xn = _ln(x, m["gamma"], m["beta"])
        h = xn @ m["w1"] + m["b1"]
        h = 0.5 * h * (1.0 + jax.lax.erf(h * _INV_SQRT2))
        x = x + m["scale"] * (h @ m["w2"] + m["b2"])
    return jnp.mean(x, axis=1) @ params["logits_w"] + params["logits_b"]


def reference_mixed(l, params, conf):
    """JAX reference with the same folding + bf16 MXU / f32-accumulate recipe
    as the Pallas kernels (tight-tolerance check)."""
    bf, f32 = jnp.bfloat16, jnp.float32
    fp = fold_params(params, conf)
    tok = _preamble(l, params["base"], conf)
    x = jnp.dot(tok.astype(bf), fp["proj_w"], preferred_element_type=f32) + fp["proj_b"]
    B, S, D = x.shape
    heads = D // HEAD_DIM

    def ln(z):
        mean = jnp.mean(z, axis=-1, keepdims=True)
        c = z - mean
        var = jnp.mean(c * c, axis=-1, keepdims=True)
        return c * jax.lax.rsqrt(var + LN_EPS)

    for lp in fp["layers"]:
        xn = ln(x)
        qkv = jnp.dot(xn.astype(bf), lp["wqkv"], preferred_element_type=f32) + lp["bqkv"]
        q, k, v = _split_heads(qkv, B, S, D, heads)
        s = jnp.einsum("bhid,bhjd->bhij", q.astype(bf), k.astype(bf),
                       preferred_element_type=f32) * HEAD_DIM ** -0.5
        p = jax.nn.softmax(s, axis=-1)
        o = jnp.einsum("bhij,bhjd->bhid", p.astype(bf), v.astype(bf),
                       preferred_element_type=f32)
        o = o.transpose(0, 2, 1, 3).reshape(B, S, D)
        y = jnp.dot(o.astype(bf), lp["wout"], preferred_element_type=f32) + lp["bout"]
        x = x + y
        xn = ln(x)
        h = jnp.dot(xn.astype(bf), lp["w1"], preferred_element_type=f32) + lp["b1"]
        h = 0.5 * h * (1.0 + jax.lax.erf(h * _INV_SQRT2))
        y = jnp.dot(h.astype(bf), lp["w2"], preferred_element_type=f32) + lp["b2"]
        x = x + y
    m = jnp.mean(x, axis=1)
    return jnp.dot(m.astype(bf), fp["logits_w"], preferred_element_type=f32) + fp["logits_b"]


if __name__ == "__main__":
    dim = 64                                  # must be a multiple of head_dim=64
    conf = {
        "mlp_mult": 4,
        "classifier_depth": 2,
        "class_count": 10,
        "siren_dim": [dim, dim],              # 2 siren layers -> seq = 2*dim = 128
        "modulation_scale": 0.1,
    }
    batch = 2

    key = jax.random.PRNGKey(0)
    kp, kd = jax.random.split(key)
    params = init_wt_params(kp, dim, conf)

    # Input: list of (w, b) "siren" weights; the module's shape contract is
    # ci = dim for every layer and sum(co) = len(siren_dim) * dim.
    l = []
    for _ in conf["siren_dim"]:
        kd, kw, kb = jax.random.split(kd, 3)
        l.append((jax.random.normal(kw, (batch, dim, dim), jnp.float32),
                  jax.random.normal(kb, (batch, dim), jnp.float32)))

    # N = batch * 2 * dim = 256 token rows -> tm=128 gives a 2-step pipelined grid.
    logits = wt_forward(l, params, conf, tm=128)
    logits = jax.block_until_ready(logits)
    assert logits.shape == (batch, conf["class_count"])

    ref_mp = reference_mixed(l, params, conf)     # same folding + bf16 recipe
    ref_fp = reference_f32(l, params, conf)       # original unfused f32 math
    err_mp = float(jnp.max(jnp.abs(logits - ref_mp)))
    err_fp = float(jnp.max(jnp.abs(logits - ref_fp)))
    assert err_mp < 2e-3, f"mixed-precision reference mismatch: {err_mp}"
    assert err_fp < 5e-2, f"f32 reference mismatch: {err_fp}"
    print("KERNEL_OK")
</pallas_src>

<mosaic_0001>
module attributes {stable_mosaic.version = 11 : i64} {
  func.func @_proj_in_kernel(%arg0: i32, %arg1: memref<128x65xf32, #tpu.memory_space<vmem>>, %arg2: memref<65x64xbf16, #tpu.memory_space<vmem>>, %arg3: memref<1x64xf32, #tpu.memory_space<vmem>>, %arg4: memref<128x64xf32, #tpu.memory_space<vmem>>) attributes {dimension_semantics = [#tpu.dimension_semantics<parallel>], iteration_bounds = array<i64: 2>, scalar_prefetch = 0 : i64, scratch_operands = 0 : i64, tpu.core_type = #tpu.core_type<tc>, window_params = [{transform_indices = @transform_0, window_bounds = array<i64: 128, 65>}, {pipeline_mode = #tpu.pipeline_mode<synchronous>, transform_indices = @transform_1, window_bounds = array<i64: 65, 64>}, {pipeline_mode = #tpu.pipeline_mode<synchronous>, transform_indices = @transform_2, window_bounds = array<i64: 1, 64>}, {transform_indices = @transform_3, window_bounds = array<i64: 128, 64>}]} {
    %c0 = arith.constant 0 : index
    %c0_0 = arith.constant 0 : index
    %0 = vector.load %arg1[%c0, %c0_0] : memref<128x65xf32, #tpu.memory_space<vmem>>, vector<128x65xf32>
    %1 = arith.truncf %0 : vector<128x65xf32> to vector<128x65xbf16>
    %c0_1 = arith.constant 0 : index
    %c0_2 = arith.constant 0 : index
    %2 = vector.load %arg2[%c0_1, %c0_2] : memref<65x64xbf16, #tpu.memory_space<vmem>>, vector<65x64xbf16>
    %cst = arith.constant dense<0.000000e+00> : vector<128x64xf32>
    %3 = tpu.matmul %1, %2, %cst {dimension_numbers = #tpu.dot_dimension_numbers<[1], [0], [0], [1], [0, 0, 1, 1], [], []>} : vector<128x65xbf16>, vector<65x64xbf16>, vector<128x64xf32> -> vector<128x64xf32>
    %c0_3 = arith.constant 0 : index
    %c0_4 = arith.constant 0 : index
    %4 = vector.load %arg3[%c0_3, %c0_4] : memref<1x64xf32, #tpu.memory_space<vmem>>, vector<1x64xf32>
    %5 = vector.broadcast %4 : vector<1x64xf32> to vector<128x64xf32>
    %6 = arith.addf %3, %5 : vector<128x64xf32>
    %c0_5 = arith.constant 0 : index
    %c0_6 = arith.constant 0 : index
    %7 = vector.load %arg4[%c0_5, %c0_6] : memref<128x64xf32, #tpu.memory_space<vmem>>, vector<128x64xf32>
    tpu.vector_store %arg4[%c0_5, %c0_6], %6 {strides = array<i32>} : memref<128x64xf32, #tpu.memory_space<vmem>>, vector<128x64xf32>,
    return
  }
  func.func @transform_0(%arg0: i32) -> (i32, i32) {
    %c0_i32 = arith.constant 0 : i32
    %c0_i32_0 = arith.constant 0 : i32
    return %arg0, %c0_i32 : i32, i32
  }
  func.func @transform_1(%arg0: i32) -> (i32, i32) {
    %c0_i32 = arith.constant 0 : i32
    %c0_i32_0 = arith.constant 0 : i32
    %c0_i32_1 = arith.constant 0 : i32
    return %c0_i32, %c0_i32_0 : i32, i32
  }
  func.func @transform_2(%arg0: i32) -> (i32, i32) {
    %c0_i32 = arith.constant 0 : i32
    %c0_i32_0 = arith.constant 0 : i32
    %c0_i32_1 = arith.constant 0 : i32
    return %c0_i32, %c0_i32_0 : i32, i32
  }
  func.func @transform_3(%arg0: i32) -> (i32, i32) {
    %c0_i32 = arith.constant 0 : i32
    %c0_i32_0 = arith.constant 0 : i32
    return %arg0, %c0_i32 : i32, i32
  }
}

</mosaic_0001>

<bundles_post_ra>
// kernel: tpu_custom_call.1
= control target key start
LH: loop header
LB: loop body
LE: loop exit
PB: predicated region body
PF: predicated region fallthrough
CT: control target
= control target key end

     0   :  { %s560_s12 = smov 0   ;;  %s662_s0 = inlined_call_operand.vmem [shape: f32[256,65], index: 0, kind: input, shape index: {}]   ;;  %s663_s1 = inlined_call_operand.vmem [shape: bf16[65,64], index: 1, kind: input, shape index: {}]   ;;  %s664_s2 = inlined_call_operand.vmem [shape: f32[1,64], index: 2, kind: input, shape index: {}]   ;;  %s665_s3 = inlined_call_operand.vmem [shape: f32[256,64], index: 3, kind: output, shape index: {}]  }
   0x1 LB: > { %s443_s13 = sadd.s32 4294967295, %s537_s12   ;;  %p447_p0 = scmp.ge.s32.totalorder %s537_s12, 1  ;;  %s537_s12 = sphi %s560_s12, %s13_s12  }
   0x2   : > { %p138_p1 = scmp.lt.s32.totalorder %s537_s12, 3 }
   0x4   : > { %p139_p2 = pnand %p447_p0, %p138_p1 }
   0x5   : > { %v526_v0 = vld [vmem:[%s663_s1] sm:$0xff] (!%p139_p2)   ;;  %v527_v1 = vld [vmem:[%s663_s1 + $0x8] sm:$0xff] (!%p139_p2)   ;;  %s448_s18 = sshll.u32 (!%p139_p2), %s443_s13, 4  ;;  %v528_v2 = vld [vmem:[%s663_s1 + $0x10] sm:$0xff] (!%p139_p2)   ;;  %vm267_vm0 = vcmask (!%p139_p2), 1040384   ;;  %v539_v5 = vmov (!%p139_p2), 0  }
   0x6   : > { %142 = sbr.rel (%p139_p2) target bundleno = 253 (0xfd), region = 32  ;;  %481 = vmatprep.subr.bf16.mxu0 (!%p139_p2), %v526_v0  ;;  %507 = vmatprep.subr.bf16.mxu1 (!%p139_p2), %v526_v0  ;;  %p163_p3 = scmp.lt.s32.totalorder (!%p139_p2), %s448_s18, 31  ;;  %v529_v3 = vld [vmem:[%s663_s1 + $0x18] sm:$0xff] (!%p139_p2)   ;;  %v530_v4 = vld [vmem:[%s663_s1 + $0x20] ss:$0 sps:$4 sm:$0x11] (!%p139_p2)  }
   0x7   : > { %482 = vmatpush3.bf16.msra.mxu0 (!%p139_p2), %v526_v0  ;;  %512 = vmatpush3.bf16.msra.mxu1 (!%p139_p2), %v526_v0  ;;  %v269_v6 = vsel (!%p139_p2), %vm267_vm0, 65535, %v539_v5  ;;  %vm242_vm1 = vcmask (!%p139_p2), 531456   ;;  %v452_v32 = vld [vmem:[%s664_s2] ss:$0 sm:$0xff] (!%p139_p2)  ;;  %vm370_vm2 = vcmask (!%p139_p2), 523264  }
   0x8   : > { %483 = vmatprep.subr.bf16.mxu0 (!%p139_p2), %v527_v1  ;;  %508 = vmatprep.subr.bf16.mxu1 (!%p139_p2), %v527_v1  ;;  %v271_v12 = vand.u32 (!%p139_p2), %v530_v4, %v269_v6 }
   0xb   : > { %484 = vmatpush3.bf16.msra.mxu0 (!%p139_p2), %v527_v1  ;;  %513 = vmatpush3.bf16.msra.mxu1 (!%p139_p2), %v527_v1 }
   0xc   : > { %485 = vmatprep.subr.bf16.mxu0 (!%p139_p2), %v528_v2  ;;  %509 = vmatprep.subr.bf16.mxu1 (!%p139_p2), %v528_v2 }
   0xd   : > { %s667_s18 = smov (!%p163_p3, %s448_s18), 31 }
   0xe   : > { %s449_s25 = sshll.u32 %s667_s18, 3 }
   0xf   : > { %s591_s28 = scalar_lea.vmem %s662_s0, %s449_s25  ;;  %486 = vmatpush3.bf16.msra.mxu0 %v528_v2  ;;  %514 = vmatpush3.bf16.msra.mxu1 %v528_v2  ;;  %s625_s6 = scalar_lea.vmem %s665_s3, %s449_s25 }
  0x10   : > { %v175_v7 = vld [vmem:[%s591_s28] sm:$0xff]  ;;  %v176_v8 = vld [vmem:[%s591_s28 + $0x8] sm:$0xff]  ;;  %487 = vmatprep.subr.bf16.mxu0 %v529_v3  ;;  %510 = vmatprep.subr.bf16.mxu1 %v529_v3  ;;  %v177_v14 = vld [vmem:[%s591_s28 + $0x10] sm:$0xff] }
  0x11   : > { %v183_v9 = vld [vmem:[%s591_s28 + $0x40] sm:$0xff]  ;;  %v191_v10 = vpack.c.bf16 %v176_v8, %v175_v7  ;;  %v184_v11 = vld [vmem:[%s591_s28 + $0x48] sm:$0xff]  ;;  %v178_v15 = vld [vmem:[%s591_s28 + $0x18] sm:$0xff] }
  0x12   : > { %v195_v13 = vpack.c.bf16 %v184_v11, %v183_v9  ;;  %v185_v16 = vld [vmem:[%s591_s28 + $0x50] sm:$0xff]  ;;  %v186_v17 = vld [vmem:[%s591_s28 + $0x58] sm:$0xff]  ;;  %v179_v18 = vld [vmem:[%s591_s28 + $0x20] sm:$0xff]  ;;  %v192_v22 = vpack.c.bf16 %v178_v15, %v177_v14 }
  0x13   : > { %491 = vmatprep.mubr.msk.bf16.mxu0 %vm242_vm1, %v191_v10  ;;  %488 = vmatpush3.bf16.msra.mxu0 %v529_v3  ;;  %v180_v19 = vld [vmem:[%s591_s28 + $0x28] sm:$0xff]  ;;  %v187_v20 = vld [vmem:[%s591_s28 + $0x60] sm:$0xff]  ;;  %v196_v23 = vpack.c.bf16 %v186_v17, %v185_v16  ;;  %v181_v26 = vld [vmem:[%s591_s28 + $0x30] sm:$0xff] }
  0x14   : > { %499 = vmatprep.mubr.msk.bf16.mxu1 %vm242_vm1, %v195_v13  ;;  %515 = vmatpush3.bf16.msra.mxu1 %v529_v3  ;;  %v188_v21 = vld [vmem:[%s591_s28 + $0x68] sm:$0xff]  ;;  %v193_v24 = vpack.c.bf16 %v180_v19, %v179_v18  ;;  %v182_v27 = vld [vmem:[%s591_s28 + $0x38] sm:$0xff]  ;;  %v189_v28 = vld [vmem:[%s591_s28 + $0x70] sm:$0xff] }
  0x15   : > { %489 = vmatprep.subr.bf16.mxu0 %v271_v12  ;;  %511 = vmatprep.subr.bf16.mxu1 %v271_v12  ;;  %v197_v25 = vpack.c.bf16 %v188_v21, %v187_v20  ;;  %v190_v29 = vld [vmem:[%s591_s28 + $0x78] sm:$0xff]  ;;  %v194_v30 = vpack.c.bf16 %v182_v27, %v181_v26 }
  0x16   : > { %v198_v31 = vpack.c.bf16 %v190_v29, %v189_v28 }
  0x17   : > { %490 = vmatpush3.bf16.msra.mxu0 %v271_v12 }
  0x18   : > { %516 = vmatpush3.bf16.msra.mxu1 %v271_v12 }
  0x1a   : > { %492 = vmatmul.mubr.msk.bf16.vlgmr.msra.gmra.mrb[0].mxu0 %vm242_vm1, %v192_v22 }
  0x1b   : > { %500 = vmatmul.mubr.msk.bf16.vlgmr.msra.gmra.mrb[0].mxu1 %vm242_vm1, %v196_v23  ;;  %495 = vmatprep.mubr.msk.bf16.mxu0 %vm242_vm1, %v193_v24 }
  0x1c   : > { %503 = vmatprep.mubr.msk.bf16.mxu1 %vm242_vm1, %v197_v25 }
  0x22   : > { %496 = vmatmul.mubr.msk.bf16.gmra.mrb[4].mxu0 %vm242_vm1, %v194_v30 }
  0x23   : > { %504 = vmatmul.mubr.msk.bf16.gmra.mrb[4].mxu1 %vm242_vm1, %v198_v31 }
  0xed   : > { %v493_v33 = vpop.f32.mrb[0].mxu0 }
  0xee   : > { %v501_v34 = vpop.f32.mrb[0].mxu1  ;;  %v316_v35 = vadd.f32 %v493_v33, %v452_v32  ;;  %v307_v37 = vpop.f32.mrb[1].mxu0 }
  0xef   : > { %v348_v36 = vadd.f32 %v501_v34, %v452_v32  ;;  %v339_v38 = vpop.f32.mrb[1].mxu1  ;;  %v308_v39 = vadd.f32 %v452_v32, %v307_v37  ;;  %v494_v41 = vpop.f32.mrb[2].mxu0 }
  0xf0   : > { %v340_v40 = vadd.f32 %v452_v32, %v339_v38  ;;  %v502_v42 = vpop.f32.mrb[2].mxu1  ;;  %373 = vst.msk [vmem:[%s625_s6 + $0x10] sm:$0xff] %vm370_vm2, %v316_v35  ;;  %v319_v43 = vadd.f32 %v494_v41, %v452_v32  ;;  %v310_v45 = vpop.f32.mrb[3].mxu0 }
  0xf1   : > { %381 = vst.msk [vmem:[%s625_s6 + $0x50] sm:$0xff] %vm370_vm2, %v348_v36  ;;  %v351_v44 = vadd.f32 %v502_v42, %v452_v32  ;;  %v342_v46 = vpop.f32.mrb[3].mxu1  ;;  %371 = vst.msk [vmem:[%s625_s6] sm:$0xff] %vm370_vm2, %v308_v39  ;;  %v311_v47 = vadd.f32 %v452_v32, %v310_v45 }
  0xf2   : > { %379 = vst.msk [vmem:[%s625_s6 + $0x40] sm:$0xff] %vm370_vm2, %v340_v40  ;;  %v343_v48 = vadd.f32 %v452_v32, %v342_v46  ;;  %374 = vst.msk [vmem:[%s625_s6 + $0x18] sm:$0xff] %vm370_vm2, %v319_v43 }
  0xf3   : > { %382 = vst.msk [vmem:[%s625_s6 + $0x58] sm:$0xff] %vm370_vm2, %v351_v44  ;;  %372 = vst.msk [vmem:[%s625_s6 + $0x8] sm:$0xff] %vm370_vm2, %v311_v47 }
  0xf4   : > { %380 = vst.msk [vmem:[%s625_s6 + $0x48] sm:$0xff] %vm370_vm2, %v343_v48 }
  0xf5   : > { %v497_v49 = vpop.f32.mrb[4].mxu0 }
  0xf6   : > { %v505_v50 = vpop.f32.mrb[4].mxu1  ;;  %v332_v51 = vadd.f32 %v497_v49, %v452_v32  ;;  %v323_v53 = vpop.f32.mrb[5].mxu0 }
  0xf7   : > { %v364_v52 = vadd.f32 %v505_v50, %v452_v32  ;;  %v355_v54 = vpop.f32.mrb[5].mxu1  ;;  %v324_v55 = vadd.f32 %v452_v32, %v323_v53  ;;  %v498_v57 = vpop.f32.mrb[6].mxu0 }
  0xf8   : > { %v356_v56 = vadd.f32 %v452_v32, %v355_v54  ;;  %v506_v58 = vpop.f32.mrb[6].mxu1  ;;  %377 = vst.msk [vmem:[%s625_s6 + $0x30] sm:$0xff] %vm370_vm2, %v332_v51  ;;  %v335_v59 = vadd.f32 %v498_v57, %v452_v32  ;;  %v326_v61 = vpop.f32.mrb[7].mxu0 }
  0xf9   : > { %385 = vst.msk [vmem:[%s625_s6 + $0x70] sm:$0xff] %vm370_vm2, %v364_v52  ;;  %v367_v60 = vadd.f32 %v506_v58, %v452_v32  ;;  %v358_v62 = vpop.f32.mrb[7].mxu1  ;;  %375 = vst.msk [vmem:[%s625_s6 + $0x20] sm:$0xff] %vm370_vm2, %v324_v55  ;;  %v327_v63 = vadd.f32 %v452_v32, %v326_v61 }
  0xfa   : > { %383 = vst.msk [vmem:[%s625_s6 + $0x60] sm:$0xff] %vm370_vm2, %v356_v56  ;;  %v359_v0 = vadd.f32 %v452_v32, %v358_v62  ;;  %378 = vst.msk [vmem:[%s625_s6 + $0x38] sm:$0xff] %vm370_vm2, %v335_v59 }
  0xfb   : > { %386 = vst.msk [vmem:[%s625_s6 + $0x78] sm:$0xff] %vm370_vm2, %v367_v60  ;;  %376 = vst.msk [vmem:[%s625_s6 + $0x28] sm:$0xff] %vm370_vm2, %v327_v63 }
  0xfc   : > { %384 = vst.msk [vmem:[%s625_s6 + $0x68] sm:$0xff] %vm370_vm2, %v359_v0 }
  0xfd PF: > { %s13_s12 = sadd.s32 1, %s537_s12  }
  0xfe   : > { %p10_p4 = scmp.ge.s32.totalorder %s13_s12, 4  }
 0x100   :  { %12 = sbr.rel (!%p10_p4) target bundleno = 1 (0x1), region = 62 }

</bundles_post_ra>
